<compile_context>
chip_gen: v6e
topology: v6e:2x2x1
jax: 0.10.0
libtpu: 0.0.40
codegen_flags: <defaults>
</compile_context>

<pallas_src>
import jax
import jax.numpy as jnp
from jax.experimental import pallas as pl
from jax.experimental.pallas import tpu as pltpu

LANE = 128
SUBLANE = 8


# ----------------------------- Pallas kernel ------------------------------ #
def _qnn_forward_kernel(x_ref, a_ref, bias_ref, c_ref, o_ref):
    # x_ref    : (TB, NIN_pad)        input-feature tile (zero padded)
    # a_ref    : (NIN_pad, H_pad)     input-encoding matrix (VMEM-resident)
    # bias_ref : (1, H_pad)           precomputed weight phase  weights @ Bw
    # c_ref    : (H_pad, NOUT_pad)    observable / readout projection
    # o_ref    : (TB, NOUT_pad)       output expectation values (lane-dense f32)
    z = jnp.dot(x_ref[...], a_ref[...], preferred_element_type=jnp.float32)
    h = jnp.cos(z + bias_ref[...])  # (1, H) phase broadcasts over the batch tile
    o_ref[...] = jnp.dot(h, c_ref[...], preferred_element_type=jnp.float32)


# ------------------------------- wrapper ----------------------------------- #
def _pad2d(x, rows, cols):
    r, c = x.shape
    return jnp.pad(x, ((0, rows - r), (0, cols - c)))


def _round_up(n, m):
    return ((n + m - 1) // m) * m


def qnn_forward(input_data, weights, A, Bw, C):
    """Pallas-backed equivalent of TorchConnector.forward (dense path).

    input_data: (num_inputs,) or (batch, num_inputs)  (any float dtype)
    weights   : (num_weights,)
    Returns float32 array of shape (num_outputs,) or (batch, num_outputs).
    """
    squeeze = input_data.ndim == 1
    x = jnp.atleast_2d(input_data).astype(jnp.float32)
    batch, num_inputs = x.shape
    hidden, num_outputs = C.shape

    if num_inputs != A.shape[0]:
        raise ValueError(
            f"Invalid input dimension! Received {input_data.shape} and "
            f"expected input compatible to {A.shape[0]}"
        )

    # Power-of-two batch buckets (min 8) -> few distinct Mosaic compiles.
    b_pad = max(SUBLANE, pl.next_power_of_2(batch))
    # Batch (M) tile: MXU-aligned when the batch allows; b_pad is a power of
    # two >= 8, so tb always divides it exactly.
    tb = min(b_pad, 256)
    grid = (b_pad // tb,)

    nin_pad = max(SUBLANE, _round_up(num_inputs, SUBLANE))
    hid_pad = _round_up(hidden, LANE)
    nout_pad = _round_up(num_outputs, LANE)  # lane-dense output stores

    # Zero padding is exact: padded x columns hit zero A rows, padded hidden
    # columns hit zero C rows, padded batch rows are sliced off below.
    x_p = _pad2d(x, b_pad, nin_pad)
    a_p = _pad2d(A.astype(jnp.float32), nin_pad, hid_pad)
    c_p = _pad2d(C.astype(jnp.float32), hid_pad, nout_pad)
    # Batch-independent weight phase, hoisted out of the per-tile hot path
    # (one tiny XLA matmul per weight update, not re-issued per grid step).
    bias = _pad2d(
        weights.astype(jnp.float32)[None, :] @ Bw.astype(jnp.float32), 1, hid_pad
    )

    out_padded = pl.pallas_call(
        _qnn_forward_kernel,
        out_shape=jax.ShapeDtypeStruct((b_pad, nout_pad), jnp.float32),
        grid_spec=pltpu.PrefetchScalarGridSpec(
            num_scalar_prefetch=0,
            grid=grid,
            in_specs=[
                pl.BlockSpec((tb, nin_pad), lambda i: (i, 0)),       # x tile
                pl.BlockSpec((nin_pad, hid_pad), lambda i: (0, 0)),  # A (resident)
                pl.BlockSpec((1, hid_pad), lambda i: (0, 0)),        # bias (resident)
                pl.BlockSpec((hid_pad, nout_pad), lambda i: (0, 0)), # C (resident)
            ],
            out_specs=pl.BlockSpec((tb, nout_pad), lambda i: (i, 0)),
        ),
        compiler_params=pltpu.CompilerParams(
            dimension_semantics=("parallel",),       # shard batch tiles across TCs
            vmem_limit_bytes=32 * 1024 * 1024,       # explicit; safe on v7x 64 MiB
        ),
    )(x_p, a_p, bias, c_p)

    result = out_padded[:batch, :num_outputs]
    if squeeze:
        # Mirrors `result_tensor = result_tensor[0]` for 1-D inputs.
        result = result[0]
    return result


def _reference(x, w, A, Bw, C):
    x2 = jnp.atleast_2d(x).astype(jnp.float32)
    z = x2 @ A + (w @ Bw)[None, :]
    y = jnp.cos(z) @ C
    return y[0] if x.ndim == 1 else y


if __name__ == "__main__":
    # Synthetic QNN configuration (small shapes).
    num_inputs = 4
    num_weights = 8
    hidden = 128
    num_outputs = 8
    batch = 2

    key = jax.random.PRNGKey(0)
    k_x, k_w, k_a, k_b, k_c, k_big = jax.random.split(key, 6)

    # TorchConnector.__init__: weights ~ Uniform(-1, 1), shape (num_weights,)
    weights = jax.random.uniform(
        k_w, (num_weights,), minval=-1.0, maxval=1.0, dtype=jnp.float32
    )
    # Fixed (deterministic) encoding / readout matrices of the surrogate QNN.
    A = jax.random.normal(k_a, (num_inputs, hidden), dtype=jnp.float32) * 0.5
    Bw = jax.random.normal(k_b, (num_weights, hidden), dtype=jnp.float32) * 0.5
    C = jax.random.normal(k_c, (hidden, num_outputs), dtype=jnp.float32) / hidden

    # Batched input, shape (batch, num_inputs).
    x = jax.random.normal(k_x, (batch, num_inputs), dtype=jnp.float32)

    out = jax.block_until_ready(qnn_forward(x, weights, A, Bw, C))
    ref = _reference(x, weights, A, Bw, C)
    assert out.shape == (batch, num_outputs)
    assert out.dtype == jnp.float32
    assert jnp.allclose(out, ref, atol=1e-4, rtol=1e-4)

    # 1-D input path (output squeezed to (num_outputs,)).
    out1d = jax.block_until_ready(qnn_forward(x[0], weights, A, Bw, C))
    assert out1d.shape == (num_outputs,)
    assert jnp.allclose(out1d, ref[0], atol=1e-4, rtol=1e-4)

    # Larger batch exercising the gridded (multi-tile, "parallel") path.
    xb = jax.random.normal(k_big, (300, num_inputs), dtype=jnp.float32)
    outb = jax.block_until_ready(qnn_forward(xb, weights, A, Bw, C))
    refb = _reference(xb, weights, A, Bw, C)
    assert outb.shape == (300, num_outputs)
    assert jnp.allclose(outb, refb, atol=1e-4, rtol=1e-4)

    print("KERNEL_OK")
</pallas_src>

<mosaic_0001>
module attributes {stable_mosaic.version = 11 : i64} {
  func.func @_qnn_forward_kernel(%arg0: i32, %arg1: memref<8x8xf32, #tpu.memory_space<vmem>>, %arg2: memref<8x128xf32, #tpu.memory_space<vmem>>, %arg3: memref<1x128xf32, #tpu.memory_space<vmem>>, %arg4: memref<128x128xf32, #tpu.memory_space<vmem>>, %arg5: memref<8x128xf32, #tpu.memory_space<vmem>>) attributes {dimension_semantics = [#tpu.dimension_semantics<parallel>], iteration_bounds = array<i64: 1>, scalar_prefetch = 0 : i64, scratch_operands = 0 : i64, tpu.core_type = #tpu.core_type<tc>, window_params = [{transform_indices = @transform_0, window_bounds = array<i64: 8, 8>}, {pipeline_mode = #tpu.pipeline_mode<synchronous>, transform_indices = @transform_1, window_bounds = array<i64: 8, 128>}, {pipeline_mode = #tpu.pipeline_mode<synchronous>, transform_indices = @transform_2, window_bounds = array<i64: 1, 128>}, {pipeline_mode = #tpu.pipeline_mode<synchronous>, transform_indices = @transform_3, window_bounds = array<i64: 128, 128>}, {transform_indices = @transform_4, window_bounds = array<i64: 8, 128>}]} {
    %c0 = arith.constant 0 : index
    %c0_0 = arith.constant 0 : index
    %0 = vector.load %arg1[%c0, %c0_0] : memref<8x8xf32, #tpu.memory_space<vmem>>, vector<8x8xf32>
    %c0_1 = arith.constant 0 : index
    %c0_2 = arith.constant 0 : index
    %1 = vector.load %arg2[%c0_1, %c0_2] : memref<8x128xf32, #tpu.memory_space<vmem>>, vector<8x128xf32>
    %cst = arith.constant dense<0.000000e+00> : vector<8x128xf32>
    %2 = tpu.matmul %0, %1, %cst {dimension_numbers = #tpu.dot_dimension_numbers<[1], [0], [0], [1], [0, 0, 1, 1], [], []>} : vector<8x8xf32>, vector<8x128xf32>, vector<8x128xf32> -> vector<8x128xf32>
    %c0_3 = arith.constant 0 : index
    %c0_4 = arith.constant 0 : index
    %3 = vector.load %arg3[%c0_3, %c0_4] : memref<1x128xf32, #tpu.memory_space<vmem>>, vector<1x128xf32>
    %4 = vector.broadcast %3 : vector<1x128xf32> to vector<8x128xf32>
    %5 = arith.addf %2, %4 : vector<8x128xf32>
    %6 = math.cos %5 : vector<8x128xf32>
    %c0_5 = arith.constant 0 : index
    %c0_6 = arith.constant 0 : index
    %7 = vector.load %arg4[%c0_5, %c0_6] : memref<128x128xf32, #tpu.memory_space<vmem>>, vector<128x128xf32>
    %cst_7 = arith.constant dense<0.000000e+00> : vector<8x128xf32>
    %8 = tpu.matmul %6, %7, %cst_7 {dimension_numbers = #tpu.dot_dimension_numbers<[1], [0], [0], [1], [0, 0, 1, 1], [], []>} : vector<8x128xf32>, vector<128x128xf32>, vector<8x128xf32> -> vector<8x128xf32>
    %c0_8 = arith.constant 0 : index
    %c0_9 = arith.constant 0 : index
    %9 = vector.load %arg5[%c0_8, %c0_9] : memref<8x128xf32, #tpu.memory_space<vmem>>, vector<8x128xf32>
    tpu.vector_store %arg5[%c0_8, %c0_9], %8 {strides = array<i32>} : memref<8x128xf32, #tpu.memory_space<vmem>>, vector<8x128xf32>,
    return
  }
  func.func @transform_0(%arg0: i32) -> (i32, i32) {
    %c0_i32 = arith.constant 0 : i32
    %c0_i32_0 = arith.constant 0 : i32
    return %arg0, %c0_i32 : i32, i32
  }
  func.func @transform_1(%arg0: i32) -> (i32, i32) {
    %c0_i32 = arith.constant 0 : i32
    %c0_i32_0 = arith.constant 0 : i32
    %c0_i32_1 = arith.constant 0 : i32
    return %c0_i32, %c0_i32_0 : i32, i32
  }
  func.func @transform_2(%arg0: i32) -> (i32, i32) {
    %c0_i32 = arith.constant 0 : i32
    %c0_i32_0 = arith.constant 0 : i32
    %c0_i32_1 = arith.constant 0 : i32
    return %c0_i32, %c0_i32_0 : i32, i32
  }
  func.func @transform_3(%arg0: i32) -> (i32, i32) {
    %c0_i32 = arith.constant 0 : i32
    %c0_i32_0 = arith.constant 0 : i32
    %c0_i32_1 = arith.constant 0 : i32
    return %c0_i32, %c0_i32_0 : i32, i32
  }
  func.func @transform_4(%arg0: i32) -> (i32, i32) {
    %c0_i32 = arith.constant 0 : i32
    %c0_i32_0 = arith.constant 0 : i32
    return %arg0, %c0_i32 : i32, i32
  }
}

</mosaic_0001>

<bundles_post_ra>
// kernel: tpu_custom_call.1
= control target key start
LH: loop header
LB: loop body
LE: loop exit
PB: predicated region body
PF: predicated region fallthrough
CT: control target
= control target key end

     0   :  { %9 = vsyncpa [#allocation3], 0  ;;  %s592_s0 = inlined_call_operand.hbm [shape: f32[8,8], index: 0, kind: input, shape index: {}]   ;;  %s593_s1 = inlined_call_operand.hbm [shape: f32[8,128], index: 1, kind: input, shape index: {}]   ;;  %s594_s2 = inlined_call_operand.vmem [shape: f32[1,128], index: 2, kind: input, shape index: {}]   ;;  %s595_s3 = inlined_call_operand.hbm [shape: f32[128,128], index: 3, kind: input, shape index: {}]   ;;  %s596_s4 = inlined_call_operand.hbm [shape: f32[8,128], index: 4, kind: output, shape index: {}]  }
   0x1   :  { %10 = vsyncpa [#allocation6], 0 }
   0x2   :  { %11 = vsyncpa [#allocation4], 0  ;;  %s517_s15 = smov [#allocation5]   ;;  %s518_s17 = smov [#allocation2]  }
   0x3   :  { %s28_s16 = sshll.u32 %s517_s15, 4  ;;  %s18_s18 = sshll.u32 %s518_s17, 4  ;;  %s29_s16 = int_to_ptr.vmem [resolvable:$true] %s28_s16  ;;  %s19_s18 = int_to_ptr.vmem [resolvable:$true] %s18_s18 }
   0x4   :  { %s439_s19 = scalar_lea.vmem %s29_s16, 128  ;;  %p444_p1 = scmp.lt.s32.totalorder %s29_s16, %s29_s16 }
   0x5   :  { %p440_p0 = scmp.ne.s32.totalorder %s29_s16, %s439_s19  ;;  %p445_p2 = scmp.lt.s32.totalorder %s439_s19, %s439_s19 }
   0x7   :  { %p446_p3 = por %p445_p2, %p444_p1 }
   0x9   :  { %p447_p4 = pnand %p446_p3, %p440_p0 }
   0xb   :  { %450 = shalt.err (!%p447_p4)
}
   0xc   :  { %31 = dma.hbm_to_vmem [thread:$0]  %s593_s1, 128, %s29_s16, [#allocation6]  }
   0xd   :  { %s459_s22 = scalar_lea.vmem %s19_s18, 128  ;;  %p464_p6 = scmp.lt.s32.totalorder %s19_s18, %s19_s18 }
   0xe   :  { %p460_p5 = scmp.ne.s32.totalorder %s19_s18, %s459_s22  ;;  %p465_p7 = scmp.lt.s32.totalorder %s459_s22, %s459_s22 }
  0x10   :  { %p466_p8 = por %p465_p7, %p464_p6 }
  0x12   :  { %p467_p9 = pnand %p466_p8, %p460_p5 }
  0x14   :  { %470 = shalt.err (!%p467_p9)
}
  0x15   :  { %21 = dma.hbm_to_vmem [thread:$0]  %s592_s0, 128, %s19_s18, [#allocation3]  }
  0x16   :  { %s519_s25 = smov [#allocation7]  }
  0x17   :  { %s39_s26 = sshll.u32 %s519_s25, 4  ;;  %s40_s26 = int_to_ptr.vmem [resolvable:$true] %s39_s26 }
  0x18   :  { %s479_s27 = scalar_lea.vmem %s40_s26, 2048  ;;  %p484_p11 = scmp.lt.s32.totalorder %s40_s26, %s40_s26 }
  0x19   :  { %p480_p10 = scmp.ne.s32.totalorder %s40_s26, %s479_s27  ;;  %p485_p12 = scmp.lt.s32.totalorder %s479_s27, %s479_s27 }
  0x1b   :  { %p486_p13 = por %p485_p12, %p484_p11 }
  0x1d   :  { %p487_p0 = pnand %p486_p13, %p480_p10 }
  0x1f   :  { %490 = shalt.err (!%p487_p0)
}
  0x20   :  { %s520_s1 = smov 128   ;;  %s521_s28 = smov 8  }
  0x21   :  { %45 = dma.hbm_to_vmem [thread:$0]  %s595_s3, 2048, %s40_s26, [#allocation6], %s520_s1, %s520_s1, %s521_s28  }
  0x22   :  { %511 = dma.done.wait [#allocation3], 128  }
  0x23   :  { %512 = vsyncadd [#allocation3], 4294967168 }
  0x24   :  { %513 = dma.done.wait [#allocation6], 2176  }
  0x25   :  { %514 = vsyncadd [#allocation6], 4294965120  ;;  %v522_v0 = vmov 0.0   ;;  %vm523_vm0 = vmmov 0   ;;  %vm64_vm1 = vcmask 64512   ;;  %v56_v1 = vld [vmem:[#allocation5] sm:$0xff] }
  0x26   :  { %369 = vmatprep.subr.mxu0 %v522_v0  ;;  %371 = vmatprep.mubr.msk.f32.mxu0 %vm523_vm0, %v522_v0  ;;  %v55_v2 = vld [vmem:[#allocation2] sm:$0xff]  ;;  %v256_v3 = vld [vmem:[#allocation7 + $0x78] sm:$0xff]  ;;  %v254_v5 = vld [vmem:[#allocation7 + $0x68] sm:$0xff]  ;;  %v524_v34 = vmov 2102212464  }
  0x27   :  { %374 = vmatprep.subr.mxu1 %v522_v0  ;;  %406 = vmatprep.mubr.msk.f32.mxu1 %vm523_vm0, %v522_v0  ;;  %v255_v4 = vld [vmem:[#allocation7 + $0x70] sm:$0xff]  ;;  %v253_v6 = vld [vmem:[#allocation7 + $0x60] sm:$0xff]  ;;  %v252_v7 = vld [vmem:[#allocation7 + $0x58] sm:$0xff]  ;;  %v525_v36 = vmov 920167782  }
  0x28   :  { %370 = vmatpush3.msra.mxu0 %v56_v1  ;;  %375 = vmatpush3.msra.mxu1 %v256_v3  ;;  %v251_v8 = vld [vmem:[#allocation7 + $0x50] sm:$0xff]  ;;  %v250_v9 = vld [vmem:[#allocation7 + $0x48] sm:$0xff]  ;;  %v249_v10 = vld [vmem:[#allocation7 + $0x40] sm:$0xff]  ;;  %v526_v40 = vmov 1326507024  }
  0x29   :  { %372 = vmatmul.mubr.msk.f32.vlgmr.msra.gmra.mxu0 %vm64_vm1, %v55_v2  ;;  %376 = vmatprep.subr.mxu1 %v522_v0  ;;  %v248_v11 = vld [vmem:[#allocation7 + $0x38] sm:$0xff]  ;;  %v247_v12 = vld [vmem:[#allocation7 + $0x30] sm:$0xff]  ;;  %v246_v13 = vld [vmem:[#allocation7 + $0x28] sm:$0xff]  ;;  %v527_v42 = vmov 683565275  }
  0x2a   :  { %377 = vmatpush3.msra.mxu1 %v255_v4  ;;  %v245_v14 = vld [vmem:[#allocation7 + $0x20] sm:$0xff]  ;;  %v244_v15 = vld [vmem:[#allocation7 + $0x18] sm:$0xff]  ;;  %v243_v16 = vld [vmem:[#allocation7 + $0x10] sm:$0xff]  ;;  %v528_v44 = vmov 2475754826  }
  0x2b   :  { %378 = vmatprep.subr.mxu1 %v522_v0  ;;  %v242_v17 = vld [vmem:[#allocation7 + $0x8] sm:$0xff]  ;;  %v241_v18 = vld [vmem:[#allocation7] sm:$0xff]  ;;  %v344_v19 = vld [vmem:[%s594_s2] ss:$0 sm:$0xff]  ;;  %v529_v47 = vmov 2131351028  }
  0x2c   :  { %379 = vmatpush3.msra.mxu1 %v254_v5  ;;  %s530_s2 = smov [#allocation8]  }
  0x2d   :  { %380 = vmatprep.subr.mxu1 %v522_v0  ;;  %s334_s5 = sshll.u32 %s530_s2, 4  ;;  %s335_s5 = int_to_ptr.vmem [resolvable:$true] %s334_s5 }
  0x2e   :  { %381 = vmatpush3.msra.mxu1 %v253_v6  ;;  %s491_s6 = scalar_lea.vmem %s335_s5, 128  ;;  %p496_p2 = scmp.lt.s32.totalorder %s335_s5, %s335_s5 }
  0x2f   :  { %382 = vmatprep.subr.mxu1 %v522_v0  ;;  %p492_p1 = scmp.ne.s32.totalorder %s335_s5, %s491_s6  ;;  %p497_p3 = scmp.lt.s32.totalorder %s491_s6, %s491_s6 }
  0x30   :  { %383 = vmatpush3.msra.mxu1 %v252_v7 }
  0x31   :  { %384 = vmatprep.subr.mxu1 %v522_v0  ;;  %p498_p4 = por %p497_p3, %p496_p2 }
  0x32   :  { %385 = vmatpush3.msra.mxu1 %v251_v8 }
  0x33   :  { %386 = vmatprep.subr.mxu1 %v522_v0  ;;  %p499_p5 = pnand %p498_p4, %p492_p1 }
  0x34   :  { %387 = vmatpush3.msra.mxu1 %v250_v9 }
  0x35   :  { %388 = vmatprep.subr.mxu1 %v522_v0 }
  0x36   :  { %389 = vmatpush3.msra.mxu1 %v249_v10 }
  0x37   :  { %390 = vmatprep.subr.mxu1 %v522_v0 }
  0x38   :  { %391 = vmatpush3.msra.mxu1 %v248_v11 }
  0x39   :  { %392 = vmatprep.subr.mxu1 %v522_v0 }
  0x3a   :  { %393 = vmatpush3.msra.mxu1 %v247_v12 }
  0x3b   :  { %394 = vmatprep.subr.mxu1 %v522_v0 }
  0x3c   :  { %395 = vmatpush3.msra.mxu1 %v246_v13 }
  0x3d   :  { %396 = vmatprep.subr.mxu1 %v522_v0 }
  0x3e   :  { %397 = vmatpush3.msra.mxu1 %v245_v14 }
  0x3f   :  { %398 = vmatprep.subr.mxu1 %v522_v0 }
  0x40   :  { %399 = vmatpush3.msra.mxu1 %v244_v15 }
  0x41   :  { %400 = vmatprep.subr.mxu1 %v522_v0 }
  0x42   :  { %401 = vmatpush3.msra.mxu1 %v243_v16 }
  0x43   :  { %402 = vmatprep.subr.mxu1 %v522_v0 }
  0x44   :  { %403 = vmatpush3.msra.mxu1 %v242_v17 }
  0x45   :  { %404 = vmatprep.subr.mxu1 %v522_v0 }
  0x46   :  { %405 = vmatpush3.msra.mxu1 %v241_v18 }
  0xe9   :  { %v134_v20 = vpop.f32.mrf.mxu0 }
  0xea   :  { %v568_v21 = vadd.f32 %v344_v19, %v134_v20 }
  0xeb   :  { %v373_v22 = vpop.f32.mrf.mxu0 }
  0xec   :  { %v141_v23 = vand.u32 2139095040, %v568_v21  ;;  %v138_v24 = vand.u32 2147483647, %v568_v21  ;;  %vm140_vm9 = vcmp.lt.s32.totalorder %v568_v21, 0  ;;  %vm230_vm14 = vweird.f32 %v568_v21 }
  0xee   :  { %v142_v25 = vshrl.u32 %v141_v23, 23  ;;  %v145_v27 = vand.u32 8388607, %v138_v24  ;;  %vm139_vm10 = vcmp.le.f32.partialorder %v138_v24, 0.7853982 }
  0xf0   :  { %v346_v26 = vadd.s32 4294967169, %v142_v25  ;;  %v146_v30 = vor.u32 8388608, %v145_v27 }
  0xf2   :  { %v148_v28 = vadd.s32 1, %v346_v26  ;;  %v186_v38 = vshll.u32 %v146_v30, 8 }
  0xf4   :  { %vm149_vm2 = vcmp.gt.s32.totalorder %v148_v28, 0 }
  0xf5   :  { %v150_v29 = vsel %vm149_vm2, %v148_v28, 0 }
  0xf6   :  { %v152_v31 = vand.u32 31, %v150_v29  ;;  %v151_v32 = vshrl.u32 %v150_v29, 5 }
  0xf8   :  { %v153_v33 = vsub.s32 32, %v152_v31  ;;  %v164_v35 = vshll.u32 %v524_v34, %v152_v31  ;;  %v167_v37 = vshll.u32 %v525_v36, %v152_v31  ;;  %v155_v43 = vshll.u32 %v527_v42, %v152_v31 }
  0xf9   :  { %v158_v46 = vshll.u32 %v528_v44, %v152_v31  ;;  %v161_v49 = vshll.u32 %v529_v47, %v152_v31  ;;  %vm173_vm3 = vcmp.lt.s32.totalorder %v151_v32, 4  ;;  %vm170_vm4 = vcmp.lt.s32.totalorder %v151_v32, 1 }
  0xfa   :  { %v165_v39 = vshrl.u32 %v525_v36, %v153_v33  ;;  %v168_v41 = vshrl.u32 %v526_v40, %v153_v33  ;;  %v156_v45 = vshrl.u32 %v528_v44, %v153_v33  ;;  %v159_v48 = vshrl.u32 %v529_v47, %v153_v33 }
  0xfb   :  { %v162_v50 = vshrl.u32 %v524_v34, %v153_v33  ;;  %v154_v54 = vshrl.u32 %v527_v42, %v153_v33  ;;  %vm171_vm5 = vcmp.lt.s32.totalorder %v151_v32, 2  ;;  %vm172_vm6 = vcmp.lt.s32.totalorder %v151_v32, 3 }
  0xfc   :  { %v166_v51 = vor.u32 %v165_v39, %v164_v35  ;;  %v169_v52 = vor.u32 %v168_v41, %v167_v37  ;;  %v157_v53 = vor.u32 %v156_v45, %v155_v43  ;;  %v160_v55 = vor.u32 %v159_v48, %v158_v46 }
  0xfd   :  { %v163_v56 = vor.u32 %v162_v50, %v161_v49 }
  0xfe   :  { %v179_v57 = vsel %vm173_vm3, %v166_v51, 920167782  ;;  %v183_v58 = vsel %vm173_vm3, %v169_v52, 1326507024  ;;  %v178_v60 = vsel %vm170_vm4, %v157_v53, %v160_v55  ;;  %v174_v63 = vsel %vm170_vm4, %v154_v54, %v157_v53 }
  0xff   :  { %v175_v59 = vsel %vm173_vm3, %v163_v56, 2102212464  ;;  %v180_v61 = vsel %vm172_vm6, %v163_v56, %v179_v57  ;;  %v182_v62 = vsel %vm170_vm4, %v160_v55, %v163_v56  ;;  %v184_v2 = vsel %vm172_vm6, %v166_v51, %v183_v58 }
 0x100   :  { %v176_v0 = vsel %vm172_vm6, %v160_v55, %v175_v59  ;;  %v181_v1 = vsel %vm171_vm5, %v178_v60, %v180_v61  ;;  %v185_v3 = vsel %vm171_vm5, %v182_v62, %v184_v2 }
 0x101   :  { %v574_v4 = vmul.u32.u64.low %v186_v38, %v181_v1  ;;  %v575_v5 = vmul.u32.u64.high %v186_v38, %v181_v1, %v574_v4  ;;  %v577_v6 = vmul.u32.u64.low %v186_v38, %v185_v3  ;;  %v578_v7 = vmul.u32.u64.high %v186_v38, %v185_v3, %v577_v6 }
 0x102   :  { %v177_v8 = vsel %vm171_vm5, %v174_v63, %v176_v0 }
 0x103   :  { %v196_v9 = vadd.s32 1, %v575_v5  ;;  %v193_v10 = vmul.u32 %v186_v38, %v177_v8  ;;  %vm195_vm7 = vc.u32 %v578_v7, %v574_v4  ;;  %v194_v23 = vadd.s32 %v574_v4, %v578_v7 }
 0x105   :  { %v197_v11 = vsel %vm195_vm7, %v196_v9, %v575_v5 }
 0x106   :  { %v198_v12 = vadd.s32 %v197_v11, %v193_v10 }
 0x108   :  { %v199_v13 = vadd.s32 536870912, %v198_v12 }
 0x10a   :  { %v200_v14 = vshrl.u32 %v199_v13, 30 }
 0x10c   :  { %v201_v15 = vshll.u32 %v200_v14, 30  ;;  %v224_v39 = vsub.s32 4, %v200_v14 }
 0x10e   :  { %v202_v16 = vsub.s32 %v198_v12, %v201_v15  ;;  %v225_v40 = vsel %vm140_vm9, %v224_v39, %v200_v14 }
 0x10f   :  { %v227_v41 = vsel %vm139_vm10, 0, %v225_v40 }
 0x110   :  { %v204_v17 = vsub.s32 0, %v202_v16  ;;  %v231_v42 = vand.u32 3, %v227_v41 }
 0x112   :  { %v347_v18 = vmin.u32 %v204_v17, %v202_v16  ;;  %vm236_vm11 = vcmp.eq.s32.totalorder %v231_v42, 2  ;;  %vm233_vm12 = vcmp.eq.s32.totalorder %v231_v42, 0  ;;  %vm232_vm13 = vcmp.lt.s32.totalorder %v231_v42, 2 }
 0x114   :  { %v206_v19 = vclz %v347_v18 }
 0x116   :  { %v348_v20 = vadd.s32 4294967294, %v206_v19 }
 0x118   :  { %vm349_vm8 = vcmp.lt.s32.totalorder %v348_v20, 0 }
 0x119   :  { %v209_v22 = vsel %vm349_vm8, 0, %v348_v20 }
 0x11a   :  { %v210_v25 = vsub.s32 32, %v209_v22  ;;  %v214_v26 = vsub.s32 4294967266, %v209_v22  ;;  %v211_v27 = vshll.u32 %v202_v16, %v209_v22 }
 0x11c   :  { %v212_v28 = vshrl.u32 %v194_v23, %v210_v25  ;;  %v215_v29 = vadd.s32 127, %v214_v26 }
 0x11e   :  { %v213_v30 = vor.u32 %v212_v28, %v211_v27  ;;  %v216_v31 = vshll.u32 %v215_v29, 23 }
 0x120   :  { %v217_v32 = vor.u32 4788187, %v216_v31  ;;  %v220_v34 = vcvt.s32.f32 %v213_v30 }
 0x122   :  { %v218_v33 = vand.u32 2147483647, %v217_v32 }
 0x124   :  { %v221_v35 = vmul.f32 %v220_v34, %v218_v33 }
 0x126   :  { %v222_v36 = vxor.u32 2147483648, %v221_v35 }
 0x128   :  { %v223_v37 = vsel %vm140_vm9, %v222_v36, %v221_v35 }
 0x129   :  { %v226_v38 = vsel %vm139_vm10, %v568_v21, %v223_v37 }
 0x12a   :  { %427 = vcosq.f32 %v226_v38 }
 0x12b   :  { %429 = vsinq.f32 %v226_v38 }
 0x137   :  { %v428_v43 = vpop.eup %427 }
 0x138   :  { %v430_v44 = vpop.eup %429  ;;  %v237_v45 = vxor.u32 2147483648, %v428_v43 }
 0x139   :  { %v234_v46 = vxor.u32 2147483648, %v430_v44 }
 0x13a   :  { %v238_v47 = vsel %vm236_vm11, %v237_v45, %v430_v44 }
 0x13b   :  { %v235_v48 = vsel %vm233_vm12, %v428_v43, %v234_v46 }
 0x13c   :  { %v239_v24 = vsel %vm232_vm13, %v235_v48, %v238_v47 }
 0x13d   :  { %v240_v49 = vsel %vm230_vm14, nan, %v239_v24 }
 0x13e   :  { %407 = vmatmul.mubr.f32.vlgmr.msra.gmra.mxu1 %v240_v49 }
 0x1fe   :  { %v323_v50 = vpop.f32.mrf.mxu1 }
 0x1ff   :  { %327 = vst [vmem:[#allocation8] sm:$0xff] %v323_v50 }
 0x200   :  { %v408_v51 = vpop.f32.mrf.mxu1 }
 0x201   :  { %502 = shalt.err (!%p499_p5)
}
 0x202   :  { %337 = dma.vmem_to_hbm [thread:$0]  %s335_s5, 128, %s596_s4, [#allocation4]  }
 0x203   :  { %515 = dma.done.wait [#allocation4], 128  }
 0x204   :  { %516 = vsyncadd [#allocation4], 4294967168 }
 0x205   :  { %341 = vsyncpa [#allocation3], 1 }
 0x206   :  { %342 = vsyncpa [#allocation6], 1 }
 0x207   :  { %343 = vsyncpa [#allocation4], 1 }

</bundles_post_ra>
